<compile_context>
chip_gen: v7x
topology: tpu7x:2x2x1
jax: 0.10.0
libtpu: 0.0.40
codegen_flags: <defaults>
</compile_context>

<pallas_src>
import functools
import math

import jax
import jax.numpy as jnp
from jax.experimental import pallas as pl
from jax.experimental.pallas import tpu as pltpu

_LANE = 128


def _soft_bce_kernel(logits_ref, target_ref, out_ref, *,
                     neg_weight, reduction, n_batch, n_classes, batch_tile):
    """One batch tile; class-major layout: logits_ref/target_ref are (C, TB)."""
    x = logits_ref[...].astype(jnp.float32)     # (C, TB) — classes on sublanes
    t = target_ref[...].astype(jnp.float32)     # (C, TB)
    C = n_classes

    # log-sigmoid identity: logp = log(sigmoid(x)) = min(x,0) - log(1+exp(-|x|)),
    # log1mp = logp - x.  One exp + one log per element; the clamp of pred to
    # [1e-7, 1-1e-7] is applied in log space (log is monotone, bounds mapped).
    log1pexp = jnp.log(1.0 + jnp.exp(-jnp.abs(x)))
    logp_raw = jnp.minimum(x, 0.0) - log1pexp
    lo = math.log(1e-7)
    hi = math.log(1.0 - 1e-7)
    logp = jnp.clip(logp_raw, lo, hi)            # (C, TB)
    log1mp = jnp.clip(logp_raw - x, lo, hi)      # (C, TB)

    # Single unrolled pass over the small static class dim: running argmax
    # (strict '>' keeps the earliest maximal index, matching torch.argmax),
    # fused gathers of target[label]/logp[label], and the class-sum of the
    # full soft-BCE term.  All running quantities are lane-dense (1, TB) rows.
    t0 = t[0:1, :]
    lp0 = logp[0:1, :]
    lm0 = log1mp[0:1, :]
    max_val = t0
    t_lab = t0
    lp_lab = lp0
    full_sum = t0 * lp0 + (1.0 - t0) * lm0
    moved = None                                  # True where argmax != 0
    for c in range(1, C):
        tc = t[c:c + 1, :]
        lpc = logp[c:c + 1, :]
        full_sum = full_sum + (tc * lpc + (1.0 - tc) * log1mp[c:c + 1, :])
        gt = tc > max_val
        max_val = jnp.where(gt, tc, max_val)
        t_lab = jnp.where(gt, tc, t_lab)
        lp_lab = jnp.where(gt, lpc, lp_lab)
        moved = gt if moved is None else jnp.logical_or(moved, gt)

    full_mean = full_sum * jnp.float32(1.0 / C)                 # label == 0 branch
    if moved is None:                                           # C == 1: argmax is 0
        loss_row = -full_mean
    else:
        pos = t_lab * lp_lab + jnp.float32(neg_weight) * lm0    # label != 0 branch
        loss_row = -jnp.where(moved, pos, full_mean)            # (1, TB) lane-dense

    if reduction == "none":
        # Lane-dense unmasked store; the OOB tail of a partial last tile is
        # clipped by Pallas on writeback.
        out_ref[...] = loss_row.astype(out_ref.dtype)
        return

    # 'mean'/'sum': one partial sum per tile, broadcast over a (1, 128) block.
    if n_batch % batch_tile == 0:
        # No tile can be partial -> no masking anywhere (review: mask only the
        # last/partial tile).
        out_ref[...] = jnp.broadcast_to(jnp.sum(loss_row), out_ref.shape)
        return

    i = pl.program_id(0)
    tile_start = i * batch_tile
    is_partial = tile_start + batch_tile > n_batch

    @pl.when(jnp.logical_not(is_partial))
    def _():
        out_ref[...] = jnp.broadcast_to(jnp.sum(loss_row), out_ref.shape)

    @pl.when(is_partial)
    def _():
        col = jax.lax.broadcasted_iota(jnp.int32, loss_row.shape, 1) + tile_start
        masked = jnp.where(col < n_batch, loss_row, 0.0)
        out_ref[...] = jnp.broadcast_to(jnp.sum(masked), out_ref.shape)


def my_soft_bce_loss(logits, target, reduction="mean", neg_weight=1.0, *,
                     class_major=False, batch_tile=None,
                     none_dtype=jnp.float32, input_buffers=None):
    """Forward of MySoftBCELoss.

    logits/target: (batch, num_classes), any float dtype (bf16 recommended at
    the HBM boundary).  With class_major=True they are (num_classes, batch)
    and used zero-copy (preferred: produce that layout upstream).
    """
    if logits.ndim != 2 or logits.shape != target.shape:
        raise ValueError("logits/target must both be (batch, num_classes) "
                         "(or (num_classes, batch) with class_major=True)")
    if reduction not in ("mean", "sum", "none"):
        raise ValueError(f"unsupported reduction: {reduction}")

    if class_major:
        lt, tt = logits, target            # (C, B): zero-copy fast path
        C, B = lt.shape
    else:
        # Module-compatible (B, C) inputs: one-time XLA transpose (full HBM
        # read+write of both inputs).  For peak throughput emit class-major
        # logits upstream and call with class_major=True.
        B, C = logits.shape
        lt, tt = logits.T, target.T

    # ---- batch tile (lane axis) -------------------------------------------
    # Padded VMEM per input block (C<=8 rows pad to 8 sublanes, f32): 32*tb B;
    # x2 double-buffer x2 inputs = 128*tb B -> 2 MiB at tb=16384 (v5e-safe).
    # Also cap the tile so there are >= 4 grid steps when B allows it, so the
    # 'parallel' axis always gives both v7x TensorCores work.
    if batch_tile is None:
        tb = 16384
        quarter = (B + 3) // 4
        quarter = ((quarter + _LANE - 1) // _LANE) * _LANE
        tb = max(_LANE, min(tb, quarter))
    else:
        tb = int(batch_tile)
        if tb <= 0:
            raise ValueError("batch_tile must be positive")
        if tb < B and tb % _LANE != 0:
            # Lane-axis blocks must be multiples of 128 (or the full batch).
            tb = ((tb + _LANE - 1) // _LANE) * _LANE
    if tb >= B:
        tb = B
    n_tiles = -(-B // tb)

    kernel = functools.partial(
        _soft_bce_kernel,
        neg_weight=float(neg_weight),
        reduction=reduction,
        n_batch=B,
        n_classes=C,
        batch_tile=tb,
    )

    if input_buffers is None:
        in_specs = [pl.BlockSpec((C, tb), lambda i: (0, i)),
                    pl.BlockSpec((C, tb), lambda i: (0, i))]
    else:
        # Optional deeper input pipelining (e.g. 3 on v5e if the trace shows
        # exposed DMA waits); default double-buffering otherwise.
        mode = pl.Buffered(int(input_buffers))
        in_specs = [pl.BlockSpec((C, tb), lambda i: (0, i), pipeline_mode=mode),
                    pl.BlockSpec((C, tb), lambda i: (0, i), pipeline_mode=mode)]

    if reduction == "none":
        out_shape = jax.ShapeDtypeStruct((1, B), none_dtype)   # lane-dense output
        out_specs = pl.BlockSpec((1, tb), lambda i: (0, i))
    else:
        # One (1, 128) partial-sum block per tile; no cross-tile accumulator,
        # so the grid stays fully 'parallel' (v7x shards it over both TCs).
        out_shape = jax.ShapeDtypeStruct((1, n_tiles * _LANE), jnp.float32)
        out_specs = pl.BlockSpec((1, _LANE), lambda i: (0, i))

    out = pl.pallas_call(
        kernel,
        out_shape=out_shape,
        grid=(n_tiles,),
        in_specs=in_specs,
        out_specs=out_specs,
        compiler_params=pltpu.CompilerParams(
            dimension_semantics=("parallel",),
        ),
    )(lt, tt)

    if reduction == "none":
        return out[0, :]
    partials = out.reshape(n_tiles, _LANE)[:, 0]
    total = jnp.sum(partials)
    if reduction == "mean":
        total = total / B
    return total


def _reference(logits, target, reduction="mean", neg_weight=1.0):
    """Vectorized pure-JAX re-statement of the PyTorch forward."""
    logits = logits.astype(jnp.float32)
    target = target.astype(jnp.float32)
    pred = jnp.clip(jax.nn.sigmoid(logits), 1e-7, 1.0 - 1e-7)
    logp = jnp.log(pred)
    log1mp = jnp.log(1.0 - pred)
    labels = jnp.argmax(target, axis=1)
    full_mean = jnp.mean(target * logp + (1.0 - target) * log1mp, axis=1)
    rows = jnp.arange(logits.shape[0])
    pos = target[rows, labels] * logp[rows, labels] + neg_weight * log1mp[:, 0]
    out = jnp.where(labels == 0, full_mean, pos)
    if reduction == "mean":
        return -jnp.mean(out)
    if reduction == "sum":
        return -jnp.sum(out)
    return -out


if __name__ == "__main__":
    key = jax.random.PRNGKey(0)
    k1, k2, k3, k4 = jax.random.split(key, 4)

    # Small case matching the module's (batch, num_classes) convention.
    B, C = 8, 4
    logits = jax.random.normal(k1, (B, C), dtype=jnp.float32)
    hard = jnp.array([0, 1, 2, 3, 0, 1, 0, 3], dtype=jnp.int32)
    soft = jax.nn.one_hot(hard, C, dtype=jnp.float32) * 0.9 + 0.025
    target = jnp.clip(soft + 0.02 * jax.random.uniform(k2, (B, C)), 0.0, 1.0)

    # Default (B, C) path.
    for red in ("mean", "sum", "none"):
        out = jax.block_until_ready(my_soft_bce_loss(logits, target, red, 1.5))
        ref = _reference(logits, target, red, 1.5)
        assert jnp.allclose(out, ref, rtol=1e-5, atol=1e-5), (red, out, ref)

    # Class-major fast path (zero-copy layout a production producer would emit).
    lt, tt = logits.T, target.T   # test setup only
    for red in ("mean", "sum", "none"):
        out = jax.block_until_ready(
            my_soft_bce_loss(lt, tt, red, 1.5, class_major=True))
        ref = _reference(logits, target, red, 1.5)
        assert jnp.allclose(out, ref, rtol=1e-5, atol=1e-5), (red, out, ref)

    # Batch larger than one tile (300 = 2*128 + 44): exercises grid > 1,
    # per-tile partial sums, last-tile-only masking and 'none' partial writeback.
    B2 = 300
    logits2 = jax.random.normal(k3, (B2, C), dtype=jnp.float32)
    hard2 = jax.random.randint(k4, (B2,), 0, C)
    target2 = jax.nn.one_hot(hard2, C, dtype=jnp.float32) * 0.9 + 0.05
    for red in ("mean", "sum", "none"):
        out = jax.block_until_ready(
            my_soft_bce_loss(logits2, target2, red, 1.0, batch_tile=128))
        ref = _reference(logits2, target2, red, 1.0)
        assert jnp.allclose(out, ref, rtol=1e-5, atol=1e-5), (red, out, ref)

    # bf16 inputs at the HBM boundary (halves traffic); math stays f32 in-kernel.
    lb, tb_ = logits.astype(jnp.bfloat16), target.astype(jnp.bfloat16)
    out = jax.block_until_ready(my_soft_bce_loss(lb, tb_, "mean", 1.0))
    ref = _reference(lb, tb_, "mean", 1.0)
    assert jnp.allclose(out, ref, rtol=1e-4, atol=1e-4), (out, ref)

    # bf16 'none' output (further shaves output traffic when the consumer allows).
    outn = jax.block_until_ready(
        my_soft_bce_loss(lb, tb_, "none", 1.0, none_dtype=jnp.bfloat16))
    refn = _reference(lb, tb_, "none", 1.0)
    assert jnp.allclose(outn.astype(jnp.float32), refn, rtol=2e-2, atol=2e-2)

    print("KERNEL_OK")
</pallas_src>

<mosaic_0001>
module attributes {stable_mosaic.version = 11 : i64} {
  func.func @_soft_bce_kernel(%arg0: i32, %arg1: memref<4x8xf32, #tpu.memory_space<vmem>>, %arg2: memref<4x8xf32, #tpu.memory_space<vmem>>, %arg3: memref<1x128xf32, #tpu.memory_space<vmem>>) attributes {dimension_semantics = [#tpu.dimension_semantics<parallel>], iteration_bounds = array<i64: 1>, scalar_prefetch = 0 : i64, scratch_operands = 0 : i64, tpu.core_type = #tpu.core_type<tc>, window_params = [{transform_indices = @transform_0, window_bounds = array<i64: 4, 8>}, {transform_indices = @transform_1, window_bounds = array<i64: 4, 8>}, {transform_indices = @transform_2, window_bounds = array<i64: 1, 128>}]} {
    %c0 = arith.constant 0 : index
    %c0_0 = arith.constant 0 : index
    %0 = vector.load %arg1[%c0, %c0_0] : memref<4x8xf32, #tpu.memory_space<vmem>>, vector<4x8xf32>
    %c0_1 = arith.constant 0 : index
    %c0_2 = arith.constant 0 : index
    %1 = vector.load %arg2[%c0_1, %c0_2] : memref<4x8xf32, #tpu.memory_space<vmem>>, vector<4x8xf32>
    %2 = math.absf %0 : vector<4x8xf32>
    %cst = arith.constant 0.000000e+00 : f32
    %3 = vector.broadcast %cst : f32 to vector<4x8xf32>
    %4 = arith.subf %3, %2 : vector<4x8xf32>
    %5 = math.exp %4 : vector<4x8xf32>
    %cst_3 = arith.constant 1.000000e+00 : f32
    %6 = vector.broadcast %cst_3 : f32 to vector<4x8xf32>
    %7 = arith.addf %6, %5 : vector<4x8xf32>
    %8 = math.log %7 : vector<4x8xf32>
    %cst_4 = arith.constant 0.000000e+00 : f32
    %9 = vector.broadcast %cst_4 : f32 to vector<4x8xf32>
    %10 = arith.minimumf %0, %9 : vector<4x8xf32>
    %11 = arith.subf %10, %8 : vector<4x8xf32>
    %cst_5 = arith.constant -16.1180954 : f32
    %cst_6 = arith.constant -1.00000008E-7 : f32
    %12 = vector.broadcast %cst_5 : f32 to vector<4x8xf32>
    %13 = arith.maximumf %12, %11 : vector<4x8xf32>
    %14 = vector.broadcast %cst_6 : f32 to vector<4x8xf32>
    %15 = arith.minimumf %14, %13 : vector<4x8xf32>
    %16 = arith.subf %11, %0 : vector<4x8xf32>
    %cst_7 = arith.constant -16.1180954 : f32
    %cst_8 = arith.constant -1.00000008E-7 : f32
    %17 = vector.broadcast %cst_7 : f32 to vector<4x8xf32>
    %18 = arith.maximumf %17, %16 : vector<4x8xf32>
    %19 = vector.broadcast %cst_8 : f32 to vector<4x8xf32>
    %20 = arith.minimumf %19, %18 : vector<4x8xf32>
    %21 = vector.extract_strided_slice %1 {offsets = [0, 0], sizes = [1, 8], strides = [1, 1]} : vector<4x8xf32> to vector<1x8xf32>
    %22 = vector.extract_strided_slice %15 {offsets = [0, 0], sizes = [1, 8], strides = [1, 1]} : vector<4x8xf32> to vector<1x8xf32>
    %23 = vector.extract_strided_slice %20 {offsets = [0, 0], sizes = [1, 8], strides = [1, 1]} : vector<4x8xf32> to vector<1x8xf32>
    %24 = arith.mulf %21, %22 : vector<1x8xf32>
    %cst_9 = arith.constant 1.000000e+00 : f32
    %25 = vector.broadcast %cst_9 : f32 to vector<1x8xf32>
    %26 = arith.subf %25, %21 : vector<1x8xf32>
    %27 = arith.mulf %26, %23 : vector<1x8xf32>
    %28 = arith.addf %24, %27 : vector<1x8xf32>
    %29 = vector.extract_strided_slice %1 {offsets = [1, 0], sizes = [1, 8], strides = [1, 1]} : vector<4x8xf32> to vector<1x8xf32>
    %30 = vector.extract_strided_slice %15 {offsets = [1, 0], sizes = [1, 8], strides = [1, 1]} : vector<4x8xf32> to vector<1x8xf32>
    %31 = arith.mulf %29, %30 : vector<1x8xf32>
    %cst_10 = arith.constant 1.000000e+00 : f32
    %32 = vector.broadcast %cst_10 : f32 to vector<1x8xf32>
    %33 = arith.subf %32, %29 : vector<1x8xf32>
    %34 = vector.extract_strided_slice %20 {offsets = [1, 0], sizes = [1, 8], strides = [1, 1]} : vector<4x8xf32> to vector<1x8xf32>
    %35 = arith.mulf %33, %34 : vector<1x8xf32>
    %36 = arith.addf %31, %35 : vector<1x8xf32>
    %37 = arith.addf %28, %36 : vector<1x8xf32>
    %38 = arith.cmpf ogt, %29, %21 : vector<1x8xf32>
    %39 = arith.select %38, %29, %21 : vector<1x8xi1>, vector<1x8xf32>
    %40 = arith.select %38, %29, %21 : vector<1x8xi1>, vector<1x8xf32>
    %41 = arith.select %38, %30, %22 : vector<1x8xi1>, vector<1x8xf32>
    %42 = vector.extract_strided_slice %1 {offsets = [2, 0], sizes = [1, 8], strides = [1, 1]} : vector<4x8xf32> to vector<1x8xf32>
    %43 = vector.extract_strided_slice %15 {offsets = [2, 0], sizes = [1, 8], strides = [1, 1]} : vector<4x8xf32> to vector<1x8xf32>
    %44 = arith.mulf %42, %43 : vector<1x8xf32>
    %cst_11 = arith.constant 1.000000e+00 : f32
    %45 = vector.broadcast %cst_11 : f32 to vector<1x8xf32>
    %46 = arith.subf %45, %42 : vector<1x8xf32>
    %47 = vector.extract_strided_slice %20 {offsets = [2, 0], sizes = [1, 8], strides = [1, 1]} : vector<4x8xf32> to vector<1x8xf32>
    %48 = arith.mulf %46, %47 : vector<1x8xf32>
    %49 = arith.addf %44, %48 : vector<1x8xf32>
    %50 = arith.addf %37, %49 : vector<1x8xf32>
    %51 = arith.cmpf ogt, %42, %39 : vector<1x8xf32>
    %52 = arith.select %51, %42, %39 : vector<1x8xi1>, vector<1x8xf32>
    %53 = arith.select %51, %42, %40 : vector<1x8xi1>, vector<1x8xf32>
    %54 = arith.select %51, %43, %41 : vector<1x8xi1>, vector<1x8xf32>
    %55 = arith.ori %38, %51 : vector<1x8xi1>
    %56 = vector.extract_strided_slice %1 {offsets = [3, 0], sizes = [1, 8], strides = [1, 1]} : vector<4x8xf32> to vector<1x8xf32>
    %57 = vector.extract_strided_slice %15 {offsets = [3, 0], sizes = [1, 8], strides = [1, 1]} : vector<4x8xf32> to vector<1x8xf32>
    %58 = arith.mulf %56, %57 : vector<1x8xf32>
    %cst_12 = arith.constant 1.000000e+00 : f32
    %59 = vector.broadcast %cst_12 : f32 to vector<1x8xf32>
    %60 = arith.subf %59, %56 : vector<1x8xf32>
    %61 = vector.extract_strided_slice %20 {offsets = [3, 0], sizes = [1, 8], strides = [1, 1]} : vector<4x8xf32> to vector<1x8xf32>
    %62 = arith.mulf %60, %61 : vector<1x8xf32>
    %63 = arith.addf %58, %62 : vector<1x8xf32>
    %64 = arith.addf %50, %63 : vector<1x8xf32>
    %65 = arith.cmpf ogt, %56, %52 : vector<1x8xf32>
    %66 = arith.select %65, %56, %53 : vector<1x8xi1>, vector<1x8xf32>
    %67 = arith.select %65, %57, %54 : vector<1x8xi1>, vector<1x8xf32>
    %68 = arith.ori %55, %65 : vector<1x8xi1>
    %cst_13 = arith.constant 2.500000e-01 : f32
    %69 = vector.broadcast %cst_13 : f32 to vector<1x8xf32>
    %70 = arith.mulf %64, %69 : vector<1x8xf32>
    %71 = arith.mulf %66, %67 : vector<1x8xf32>
    %cst_14 = arith.constant 1.500000e+00 : f32
    %72 = vector.broadcast %cst_14 : f32 to vector<1x8xf32>
    %73 = arith.mulf %72, %23 : vector<1x8xf32>
    %74 = arith.addf %71, %73 : vector<1x8xf32>
    %75 = arith.select %68, %74, %70 : vector<1x8xi1>, vector<1x8xf32>
    %cst_15 = arith.constant 0.000000e+00 : f32
    %76 = vector.broadcast %cst_15 : f32 to vector<1x8xf32>
    %77 = arith.subf %76, %75 : vector<1x8xf32>
    %78 = vector.shape_cast %77 : vector<1x8xf32> to vector<1x1x8xf32>
    %cst_16 = arith.constant dense<0.000000e+00> : vector<1xf32>
    %79 = vector.multi_reduction <add>, %78, %cst_16 [1, 2] : vector<1x1x8xf32> to vector<1xf32>
    %80 = vector.shape_cast %79 : vector<1xf32> to vector<1x1x1xf32>
    %81 = vector.extract %80[0, 0, 0] : f32 from vector<1x1x1xf32>
    %82 = vector.broadcast %81 : f32 to vector<1x128xf32>
    %c0_17 = arith.constant 0 : index
    %c0_18 = arith.constant 0 : index
    %83 = vector.load %arg3[%c0_17, %c0_18] : memref<1x128xf32, #tpu.memory_space<vmem>>, vector<1x128xf32>
    tpu.vector_store %arg3[%c0_17, %c0_18], %82 {strides = array<i32>} : memref<1x128xf32, #tpu.memory_space<vmem>>, vector<1x128xf32>,
    return
  }
  func.func @transform_0(%arg0: i32) -> (i32, i32) {
    %c0_i32 = arith.constant 0 : i32
    %c0_i32_0 = arith.constant 0 : i32
    return %c0_i32, %arg0 : i32, i32
  }
  func.func @transform_1(%arg0: i32) -> (i32, i32) {
    %c0_i32 = arith.constant 0 : i32
    %c0_i32_0 = arith.constant 0 : i32
    return %c0_i32, %arg0 : i32, i32
  }
  func.func @transform_2(%arg0: i32) -> (i32, i32) {
    %c0_i32 = arith.constant 0 : i32
    %c0_i32_0 = arith.constant 0 : i32
    return %c0_i32, %arg0 : i32, i32
  }
}

</mosaic_0001>

<bundles_post_ra>
// kernel: tpu_custom_call.1
= control target key start
LH: loop header
LB: loop body
LE: loop exit
PB: predicated region body
PF: predicated region fallthrough
CT: control target
= control target key end

     0   :  { %7 = vsyncpa [#allocation3], 0  ;;  %s305_s0 = inlined_call_operand.hbm [shape: f32[4,8], index: 0, kind: input, shape index: {}]   ;;  %s306_s1 = inlined_call_operand.hbm [shape: f32[4,8], index: 1, kind: input, shape index: {}]   ;;  %s307_s2 = inlined_call_operand.hbm [shape: f32[1,128], index: 2, kind: output, shape index: {}]  }
   0x1   :  { %8 = vsyncpa [#allocation6], 0 }
   0x2   :  { %9 = vsyncpa [#allocation4], 0  ;;  %s230_s9 = smov [#allocation2]   ;;  %s231_s11 = smov [#allocation5]  }
   0x3   :  { %s16_s10 = sshll.u32 %s230_s9, 4  ;;  %s26_s12 = sshll.u32 %s231_s11, 4  ;;  %s17_s10 = int_to_ptr.vmem [resolvable:$true] %s16_s10  ;;  %s27_s12 = int_to_ptr.vmem [resolvable:$true] %s26_s12 }
   0x4   :  { %s158_s15 = scalar_lea.hbm %s305_s0, 64 }
   0x5   :  { %p159_p0 = scmp.ne.s32.totalorder %s305_s0, %s158_s15  ;;  %p162_p1 = scmp.lt.u32.totalorder %s158_s15, %s305_s0 }
   0x7   :  { %p164_p2 = pnand %p162_p1, %p159_p0 }
   0x9   :  { %167 = shalt.err (!%p164_p2)
}
   0xa   :  { %s168_s20 = scalar_lea.vmem %s17_s10, 64  ;;  %p173_p4 = scmp.lt.s32.totalorder %s17_s10, %s17_s10 }
   0xb   :  { %p169_p3 = scmp.ne.s32.totalorder %s17_s10, %s168_s20  ;;  %p174_p5 = scmp.lt.s32.totalorder %s168_s20, %s168_s20 }
   0xd   :  { %p175_p6 = por %p174_p5, %p173_p4 }
   0xf   :  { %p176_p7 = pnand %p175_p6, %p169_p3 }
  0x11   :  { %179 = shalt.err (!%p176_p7)
}
  0x12   :  { %19 = dma.hbm_to_vmem [thread:$0]  %s305_s0, 64, %s17_s10, [#allocation3]  }
  0x13   :  { %s180_s25 = scalar_lea.hbm %s306_s1, 64 }
  0x14   :  { %p181_p8 = scmp.ne.s32.totalorder %s306_s1, %s180_s25  ;;  %p184_p9 = scmp.lt.u32.totalorder %s180_s25, %s306_s1 }
  0x16   :  { %p186_p10 = pnand %p184_p9, %p181_p8 }
  0x18   :  { %189 = shalt.err (!%p186_p10)
}
  0x19   :  { %s190_s30 = scalar_lea.vmem %s27_s12, 64  ;;  %p195_p12 = scmp.lt.s32.totalorder %s27_s12, %s27_s12 }
  0x1a   :  { %p191_p11 = scmp.ne.s32.totalorder %s27_s12, %s190_s30  ;;  %p196_p13 = scmp.lt.s32.totalorder %s190_s30, %s190_s30 }
  0x1c   :  { %p197_p0 = por %p196_p13, %p195_p12 }
  0x1e   :  { %p198_p1 = pnand %p197_p0, %p191_p11 }
  0x20   :  { %201 = shalt.err (!%p198_p1)
}
  0x21   :  { %29 = dma.hbm_to_vmem [thread:$0]  %s306_s1, 64, %s27_s12, [#allocation6]  }
  0x22   :  { %224 = dma.done.wait [#allocation3], 64  }
  0x23   :  { %225 = vsyncadd [#allocation3], 4294967232 }
  0x24   :  { %226 = dma.done.wait [#allocation6], 64  }
  0x25   :  { %227 = vsyncadd [#allocation6], 4294967232  ;;  %v36_v0 = vld [vmem:[#allocation2] sm:$0xf]  ;;  %v37_v4 = vld [vmem:[#allocation5] sm:$0xf] }
  0x26   :  { %v38_v1 = vand.u32 2147483647, %v36_v0  ;;  %v61_v7 = vrot.slane %v37_v4, 7  ;;  %v45_v11 = vmin.f32 %v36_v0, 0.0  ;;  %v53_v21 = vsub.f32 1.0, %v37_v4  ;;  %s233_s1 = smov [#allocation7]  }
  0x27   :  { %v232_v28 = vmov 0   ;;  %vm119_vm7 = vcmask 57344   ;;  %s138_s4 = sshll.u32 %s233_s1, 4  ;;  %s139_s4 = int_to_ptr.vmem [resolvable:$true] %s138_s4 }
  0x28   :  { %v39_v2 = vsub.f32 0.0, %v38_v1  ;;  %vm273_vm0 = vcmp.gt.f32.partialorder %v37_v4, %v61_v7  ;;  %s202_s6 = scalar_lea.vmem %s139_s4, 16  ;;  %s206_s7 = scalar_lea.vmem %s139_s4, 32 }
  0x29   :  { %v64_v9 = vsel %vm273_vm0, %v37_v4, %v61_v7  ;;  %p203_p2 = scmp.ne.s32.totalorder %s139_s4, %s202_s6  ;;  %p207_p3 = scmp.lt.s32.totalorder %s139_s4, %s139_s4 }
  0x2a   :  { %v40_v3 = vmul.f32 1.442695, %v39_v2  ;;  %v73_v10 = vrot.slane %v64_v9, 7  ;;  %p208_p4 = scmp.lt.s32.totalorder %s206_s7, %s202_s6 }
  0x2c   :  { %154 = vpow2.f32 %v40_v3  ;;  %vm279_vm1 = vcmp.gt.f32.partialorder %v37_v4, %v73_v10  ;;  %p209_p5 = por %p208_p4, %p207_p3 }
  0x2d   :  { %v76_v18 = vsel %vm279_vm1, %v37_v4, %v73_v10  ;;  %v81_v29 = vsel %vm279_vm1, 1, %v232_v28 }
  0x2e   :  { %v89_v22 = vrot.slane %v76_v18, 7  ;;  %v82_v34 = vrot.slane %v81_v29, 1  ;;  %p210_p6 = pnand %p209_p5, %p203_p2 }
  0x30   :  { %vm91_vm2 = vcmp.gt.f32.partialorder %v37_v4, %v89_v22  ;;  %vm83_vm3 = vcmp.ne.s32.totalorder %v82_v34, 0 }
  0x31   :  { %v97_v35 = vsel %vm91_vm2, 1, %v232_v28  ;;  %v92_v38 = vsel %vm91_vm2, %v37_v4, %v89_v22  ;;  %vm84_vm4 = vmor %vm273_vm0, %vm83_vm3 }
  0x32   :  { %v98_v44 = vrot.slane %v97_v35, 2 }
  0x34   :  { %vm99_vm5 = vcmp.ne.s32.totalorder %v98_v44, 0 }
  0x35   :  { %vm100_vm6 = vmor %vm84_vm4, %vm99_vm5 }
  0x36   :  { %v155_v5 = vpop.eup %154 }
  0x37   :  { %v42_v6 = vadd.f32 1.0, %v155_v5 }
  0x39   :  { %156 = vlog2.f32 %v42_v6 }
  0x43   :  { %v157_v12 = vpop.eup %156 }
  0x44   :  { %v44_v13 = vmul.f32 0.6931472, %v157_v12 }
  0x46   :  { %v46_v15 = vsub.f32 %v45_v11, %v44_v13 }
  0x48   :  { %v47_v16 = vmax.f32 %v46_v15, -16.118095  ;;  %v49_v17 = vsub.f32 %v46_v15, %v36_v0 }
  0x4a   :  { %v48_v19 = vmin.f32 %v47_v16, -1.0000001e-07  ;;  %v50_v20 = vmax.f32 %v49_v17, -16.118095 }
  0x4c   :  { %v51_v23 = vmin.f32 %v50_v20, -1.0000001e-07  ;;  %v52_v24 = vmul.f32 %v48_v19, %v37_v4  ;;  %v66_v25 = vrot.slane %v48_v19, 7 }
  0x4e   :  { %v54_v26 = vmul.f32 %v53_v21, %v51_v23  ;;  %v68_v27 = vsel %vm273_vm0, %v48_v19, %v66_v25  ;;  %v103_v31 = vmul.f32 1.5, %v51_v23 }
  0x4f   :  { %v78_v30 = vrot.slane %v68_v27, 7 }
  0x50   :  { %v55_v32 = vadd.f32 %v54_v26, %v52_v24  ;;  %v105_v40 = vrot.slane %v103_v31, 5 }
  0x51   :  { %v80_v33 = vsel %vm279_vm1, %v48_v19, %v78_v30 }
  0x52   :  { %v57_v36 = vrot.slane %v55_v32, 1  ;;  %v69_v37 = vrot.slane %v55_v32, 2  ;;  %v94_v39 = vrot.slane %v80_v33, 7  ;;  %v85_v42 = vrot.slane %v55_v32, 3 }
  0x54   :  { %v59_v41 = vadd.f32 %v57_v36, %v55_v32  ;;  %v96_v43 = vsel %vm91_vm2, %v48_v19, %v94_v39 }
  0x55   :  { %v102_v45 = vmul.f32 %v96_v43, %v92_v38 }
  0x56   :  { %v71_v46 = vadd.f32 %v69_v37, %v59_v41 }
  0x57   :  { %v107_v47 = vadd.f32 %v105_v40, %v102_v45 }
  0x58   :  { %v87_v48 = vadd.f32 %v85_v42, %v71_v46 }
  0x59   :  { %v109_v50 = vrot.slane %v107_v47, 2 }
  0x5a   :  { %v101_v49 = vmul.f32 0.25, %v87_v48 }
  0x5c   :  { %v112_v51 = vrot.slane %v101_v49, 7 }
  0x5e   :  { %v114_v52 = vsel %vm100_vm6, %v109_v50, %v112_v51 }
  0x5f   :  { %v115_v53 = vsub.f32 0.0, %v114_v52 }
  0x61   :  { %v117_v54 = vrot.slane %v115_v53, 1 }
  0x63   :  { %v120_v55 = vsel %vm119_vm7, %v117_v54, 0.0 }
  0x64   :  { %121 = vadd.xlane.f32.xlu0 %v120_v55 }
  0xf1   :  { %v122_v56 = vpop.xlane.xlu0 %121 }
  0xf2   :  { %v123_v57 = vrot.slane %v122_v56, 4 }
  0xf4   :  { %v124_v58 = vadd.f32 %v123_v57, %v122_v56 }
  0xf6   :  { %v125_v59 = vrot.slane %v124_v58, 2 }
  0xf8   :  { %v126_v60 = vadd.f32 %v125_v59, %v124_v58 }
  0xfa   :  { %v127_v61 = vrot.slane %v126_v60, 1 }
  0xfc   :  { %v128_v62 = vadd.f32 %v127_v61, %v126_v60 }
  0xfe   :  { %148 = vpush %v128_v62 }
 0x12f   :  { %s149_s5 = spop %148 }
 0x130   :  { %v130_v63 = vstv %s149_s5 }
 0x131   :  { %131 = vst [vmem:[#allocation7] sm:$0x1] %v130_v63 }
 0x132   :  { %213 = shalt.err (!%p210_p6)
}
 0x133   :  { %s214_s10 = scalar_lea.hbm %s307_s2, 16 }
 0x134   :  { %p215_p7 = scmp.ne.s32.totalorder %s307_s2, %s214_s10  ;;  %p218_p8 = scmp.lt.u32.totalorder %s214_s10, %s307_s2 }
 0x136   :  { %p220_p9 = pnand %p218_p8, %p215_p7 }
 0x138   :  { %223 = shalt.err (!%p220_p9)
}
 0x139   :  { %141 = dma.vmem_to_hbm [thread:$0]  %s139_s4, 16, %s307_s2, [#allocation4]  }
 0x13a   :  { %228 = dma.done.wait [#allocation4], 16  }
 0x13b   :  { %229 = vsyncadd [#allocation4], 4294967280 }
 0x13c   :  { %145 = vsyncpa [#allocation3], 1 }
 0x13d   :  { %146 = vsyncpa [#allocation6], 1 }
 0x13e   :  { %147 = vsyncpa [#allocation4], 1 }

</bundles_post_ra>
